<compile_context>
chip_gen: v5e
topology: v5e:2x2
jax: 0.10.0
libtpu: 0.0.40
codegen_flags: <defaults>
</compile_context>

<pallas_src>
import math

import jax
import jax.numpy as jnp
from jax.experimental import pallas as pl
from jax.experimental.pallas import tpu as pltpu

LEAKY_SLOPE = 0.01  # nn.LeakyReLU default negative_slope
GROUPS = 4


def _round_up(x, m):
    return (x + m - 1) // m * m


def _make_kernel(*, pool, use_sizer, L, nb):
    """Build a kernel closure for a fixed (pool, use_sizer, L, samples-per-block)."""
    M = nb * L  # rows per grid step (nb whole samples) -- invariant: whole samples only

    def body(x_ref, w1_ref, w2_ref, w3_ref, o_ref, y_scr):
        x = x_ref[...]                          # (M, Cin) f32, natural channel width

        # Per-sample local row index -> boundary masks, computed ONCE and reused
        # for both pad=1 convs (review item: hoist mask construction).
        row = jax.lax.broadcasted_iota(jnp.int32, (M, 1), 0)
        if (L & (L - 1)) == 0:                  # power-of-two length: cheap bit-and
            local = jnp.bitwise_and(row, L - 1)
        else:
            local = jax.lax.rem(row, L)
        not_first = local != 0                  # tap k=0 reads row i-1
        not_last = local != (L - 1)             # tap k=2 reads row i+1

        def conv3(inp, w_ref):
            # inp: (M, K) f32.  Mask the narrow *shifted inputs*, not the conv
            # outputs.  Rolls are done in f32 before the bf16 cast (packed-bf16
            # sublane rolls lower poorly).  Block == whole samples, so the roll
            # wrap-around rows are exactly the masked-off boundary rows.
            prev = jnp.where(not_first, pltpu.roll(inp, shift=1, axis=0), 0.0)
            # NOTE: shift=M-1 is the "-1" rotate; kept because negative shifts are
            # not guaranteed by pltpu.roll.  XLU cost is one lane-tile per 8 rows.
            nxt = jnp.where(not_last, pltpu.roll(inp, shift=M - 1, axis=0), 0.0)
            acc = jnp.dot(inp.astype(jnp.bfloat16), w_ref[1],
                          preferred_element_type=jnp.float32)
            acc = acc + jnp.dot(prev.astype(jnp.bfloat16), w_ref[0],
                                preferred_element_type=jnp.float32)
            acc = acc + jnp.dot(nxt.astype(jnp.bfloat16), w_ref[2],
                                preferred_element_type=jnp.float32)
            return acc                          # (M, Cout) f32

        r1 = conv3(x, w1_ref)                                 # (M, 2*Cin) f32
        r1 = jnp.where(r1 > 0, r1, LEAKY_SLOPE * r1)          # LeakyReLU in f32
        r2 = conv3(r1, w2_ref)                                # (M, Cin) f32
        y = x + r2                                            # residual in f32

        if pool:
            # MaxPool1d(2): stride-2 sublane loads from a narrow VMEM scratch
            # (no reshape relayout); scratch is only (M, Cin) now.
            y_scr[...] = y
            half = M // 2
            y = jnp.maximum(y_scr[pl.ds(0, half, stride=2), :],
                            y_scr[pl.ds(1, half, stride=2), :])

        if use_sizer:
            y = jnp.dot(y.astype(jnp.bfloat16), w3_ref[...],
                        preferred_element_type=jnp.float32)   # 1x1 conv

        o_ref[...] = y.astype(o_ref.dtype)                    # natural-width store

    if use_sizer and pool:
        def kernel(x_ref, w1_ref, w2_ref, w3_ref, o_ref, y_scr):
            body(x_ref, w1_ref, w2_ref, w3_ref, o_ref, y_scr)
    elif use_sizer:
        def kernel(x_ref, w1_ref, w2_ref, w3_ref, o_ref):
            body(x_ref, w1_ref, w2_ref, w3_ref, o_ref, None)
    elif pool:
        def kernel(x_ref, w1_ref, w2_ref, o_ref, y_scr):
            body(x_ref, w1_ref, w2_ref, None, o_ref, y_scr)
    else:
        def kernel(x_ref, w1_ref, w2_ref, o_ref):
            body(x_ref, w1_ref, w2_ref, None, o_ref, None)
    return kernel


def residual1dconv(x_blc, w1_dense, w2_dense, w3_dense, *, pool, target_rows=2048):
    """x_blc: (B, L, Cin) f32, channels-last. w*_dense: dense tap-major weights
    (3, Cin, 2Cin), (3, 2Cin, Cin), optional (Cin, Cout). Returns (B, L_out, C_out) f32."""
    B, L, Cin = x_blc.shape
    use_sizer = w3_dense is not None
    if pool:
        assert L % 2 == 0, "MaxPool1d(2): even L required (PyTorch floors odd lengths)"
    L_out = L // 2 if pool else L
    C_final = int(w3_dense.shape[1]) if use_sizer else Cin

    # Samples per grid step: ~target_rows rows per step (amortize ~0.35us/step),
    # block row counts kept multiples of 8 (pooled output too).
    req = 16 if pool else 8
    unit = req // math.gcd(L, req)           # smallest nb with 8-mult in/out rows
    nb = max(1, target_rows // L)
    nb = max(unit, (nb // unit) * unit)
    # v7x has 2 TensorCores: ensure >= 2 grid steps whenever the batch permits,
    # so the "parallel" axis actually spans both cores.
    b_units = -(-B // unit)
    if b_units >= 2:
        nb = min(nb, max(unit, (b_units // 2) * unit))
    else:
        nb = unit
    b_pad = _round_up(B, nb)
    n_blocks = b_pad // nb
    m_rows = nb * L
    m_out = nb * L_out

    # Flatten (B, L) -> rows.  NO channel padding (DMA only real bytes); only pad
    # rows with whole zero samples when B % nb != 0 (harmless through bias-free convs).
    x_rows = x_blc.reshape(B * L, Cin).astype(jnp.float32)
    if b_pad != B:
        x_rows = jnp.pad(x_rows, ((0, (b_pad - B) * L), (0, 0)))

    # Weights at natural sizes, bf16 MXU operands (halves weight DMA bytes).
    w1p = jnp.asarray(w1_dense, jnp.bfloat16)        # (3, Cin, 2Cin)
    w2p = jnp.asarray(w2_dense, jnp.bfloat16)        # (3, 2Cin, Cin)

    operands = [x_rows, w1p, w2p]
    in_specs = [
        pl.BlockSpec((m_rows, Cin), lambda i: (i, 0)),
        pl.BlockSpec(tuple(w1p.shape), lambda i: (0, 0, 0)),
        pl.BlockSpec(tuple(w2p.shape), lambda i: (0, 0, 0)),
    ]
    if use_sizer:
        w3p = jnp.asarray(w3_dense, jnp.bfloat16)    # (Cin, Cout)
        operands.append(w3p)
        in_specs.append(pl.BlockSpec(tuple(w3p.shape), lambda i: (0, 0)))

    scratch_shapes = [pltpu.VMEM((m_rows, Cin), jnp.float32)] if pool else []

    kernel = _make_kernel(pool=pool, use_sizer=use_sizer, L=L, nb=nb)

    # VMEM budget: sub-128-lane temporaries are lane-padded to 128 in VMEM, so
    # budget ~24 lane-padded f32 rows-arrays of m_rows rows (covers double-buffered
    # blocks + compiler temporaries).  Clamp to stay within v7x's 64 MiB physical.
    vmem_limit = int(min(56 << 20, max(32 << 20, 24 * m_rows * 512)))

    out = pl.pallas_call(
        kernel,
        out_shape=jax.ShapeDtypeStruct((b_pad * L_out, C_final), jnp.float32),
        grid_spec=pltpu.PrefetchScalarGridSpec(
            num_scalar_prefetch=0,
            grid=(n_blocks,),
            in_specs=in_specs,
            out_specs=pl.BlockSpec((m_out, C_final), lambda i: (i, 0)),
            scratch_shapes=scratch_shapes,
        ),
        compiler_params=pltpu.CompilerParams(
            dimension_semantics=("parallel",),
            vmem_limit_bytes=vmem_limit,
        ),
    )(*operands)

    out = out.reshape(b_pad, L_out, C_final)
    return out[:B] if b_pad != B else out


# ---------------- parameter construction (deterministic, synthetic) ----------------

def make_grouped_weight(key, cout, cin, groups, ksize, scale=0.1):
    """PyTorch Conv1d weight layout: (cout, cin//groups, ksize)."""
    return scale * jax.random.normal(key, (cout, cin // groups, ksize), jnp.float32)


def grouped_to_dense(w_torch, cin, cout, groups):
    """(cout, cin//g, k) -> block-diagonal dense (k, cin, cout).
    TODO(synk): for C/groups >= 128 switch to per-group contraction instead of
    embedding 75% structural zeros into the dense weight."""
    ksize = w_torch.shape[-1]
    cig, cog = cin // groups, cout // groups
    dense = jnp.zeros((ksize, cin, cout), jnp.float32)
    for g in range(groups):
        blk = jnp.transpose(w_torch[g * cog:(g + 1) * cog], (2, 1, 0))  # (k, cig, cog)
        dense = dense.at[:, g * cig:(g + 1) * cig, g * cog:(g + 1) * cog].set(blk)
    return dense


# ---------------- pure-JAX reference (matches PyTorch semantics, f32) ----------------

def reference_forward(x_bcl, w1_t, w2_t, w3_t, pool):
    def conv(x, w, groups, pad):
        return jax.lax.conv_general_dilated(
            x, w, window_strides=(1,), padding=[(pad, pad)],
            dimension_numbers=("NCH", "OIH", "NCH"),
            feature_group_count=groups)
    r1 = conv(x_bcl, w1_t, GROUPS, 1)
    r1 = jnp.where(r1 > 0, r1, LEAKY_SLOPE * r1)
    r2 = conv(r1, w2_t, GROUPS, 1)
    y = x_bcl + r2
    if pool:
        B, C, L = y.shape
        y = jnp.max(y.reshape(B, C, L // 2, 2), axis=-1)
    if w3_t is not None:
        y = conv(y, w3_t, 1, 0)
    return y


def _run_case(x_bcl, w1_t, w2_t, w3_t, w1_d, w2_d, w3_d, pool, expect_shape):
    x_blc = jnp.transpose(x_bcl, (0, 2, 1))
    out_blc = jax.block_until_ready(residual1dconv(x_blc, w1_d, w2_d, w3_d, pool=pool))
    out_bcl = jnp.transpose(out_blc, (0, 2, 1))
    ref_bcl = reference_forward(x_bcl, w1_t, w2_t, w3_t, pool)
    assert out_bcl.shape == ref_bcl.shape == expect_shape, (out_bcl.shape, expect_shape)
    err = float(jnp.max(jnp.abs(out_bcl - ref_bcl)))
    assert err < 2e-2, err  # bf16 matmul operands -> relaxed tolerance
    return err


if __name__ == "__main__":
    B, C_in, C_out, L = 2, 8, 16, 16

    key = jax.random.PRNGKey(0)
    kx, k1, k2, k3, kx2 = jax.random.split(key, 5)

    # x in PyTorch NCW layout
    x_bcl = jax.random.normal(kx, (B, C_in, L), jnp.float32)

    # Conv weights (PyTorch layouts, bias=False in the module)
    w1_t = make_grouped_weight(k1, 2 * C_in, C_in, GROUPS, 3)   # r1: (2C, C/4, 3)
    w2_t = make_grouped_weight(k2, C_in, 2 * C_in, GROUPS, 3)   # r2: (C, 2C/4, 3)
    w3_t = make_grouped_weight(k3, C_out, C_in, 1, 1)           # channel_sizer: (Cout, Cin, 1)

    # Dense tap-major forms used by the kernel
    w1_d = grouped_to_dense(w1_t, C_in, 2 * C_in, GROUPS)       # (3, C, 2C)
    w2_d = grouped_to_dense(w2_t, 2 * C_in, C_in, GROUPS)       # (3, 2C, C)
    w3_d = jnp.transpose(w3_t[:, :, 0], (1, 0))                 # (Cin, Cout)

    # --- config 1: pool=True, channel sizer present ---
    _run_case(x_bcl, w1_t, w2_t, w3_t, w1_d, w2_d, w3_d,
              pool=True, expect_shape=(B, C_out, L // 2))

    # --- config 2: pool=False, no channel sizer (in == out channels) ---
    _run_case(x_bcl, w1_t, w2_t, None, w1_d, w2_d, None,
              pool=False, expect_shape=(B, C_in, L))

    # --- config 3: pool=True, no sizer, odd batch -> exercises row padding + 3-step grid ---
    B3, L3 = 5, 8
    x3_bcl = jax.random.normal(kx2, (B3, C_in, L3), jnp.float32)
    _run_case(x3_bcl, w1_t, w2_t, None, w1_d, w2_d, None,
              pool=True, expect_shape=(B3, C_in, L3 // 2))

    print("KERNEL_OK")
</pallas_src>

<mosaic_0001>
module attributes {stable_mosaic.version = 11 : i64} {
  func.func @kernel(%arg0: i32, %arg1: memref<16x8xf32, #tpu.memory_space<vmem>>, %arg2: memref<3x8x16xbf16, #tpu.memory_space<vmem>>, %arg3: memref<3x16x8xbf16, #tpu.memory_space<vmem>>, %arg4: memref<8x16xbf16, #tpu.memory_space<vmem>>, %arg5: memref<8x16xf32, #tpu.memory_space<vmem>>, %arg6: memref<16x8xf32, #tpu.memory_space<vmem>>) attributes {dimension_semantics = [#tpu.dimension_semantics<parallel>], iteration_bounds = array<i64: 2>, scalar_prefetch = 0 : i64, scratch_operands = 1 : i64, tpu.core_type = #tpu.core_type<tc>, window_params = [{transform_indices = @transform_0, window_bounds = array<i64: 16, 8>}, {pipeline_mode = #tpu.pipeline_mode<synchronous>, transform_indices = @transform_1, window_bounds = array<i64: 3, 8, 16>}, {pipeline_mode = #tpu.pipeline_mode<synchronous>, transform_indices = @transform_2, window_bounds = array<i64: 3, 16, 8>}, {pipeline_mode = #tpu.pipeline_mode<synchronous>, transform_indices = @transform_3, window_bounds = array<i64: 8, 16>}, {transform_indices = @transform_4, window_bounds = array<i64: 8, 16>}]} {
    %c0 = arith.constant 0 : index
    %c0_0 = arith.constant 0 : index
    %0 = vector.load %arg1[%c0, %c0_0] : memref<16x8xf32, #tpu.memory_space<vmem>>, vector<16x8xf32>
    %1 = tpu.iota {dimensions = array<i32: 0>} : vector<16x1xi32>
    %c15_i32 = arith.constant 15 : i32
    %2 = vector.broadcast %c15_i32 : i32 to vector<16x1xi32>
    %3 = arith.andi %1, %2 : vector<16x1xi32>
    %c0_i32 = arith.constant 0 : i32
    %4 = vector.broadcast %c0_i32 : i32 to vector<16x1xi32>
    %5 = arith.cmpi ne, %3, %4 : vector<16x1xi32>
    %c15_i32_1 = arith.constant 15 : i32
    %6 = vector.broadcast %c15_i32_1 : i32 to vector<16x1xi32>
    %7 = arith.cmpi ne, %3, %6 : vector<16x1xi32>
    %c1_i32 = arith.constant 1 : i32
    %8 = tpu.dynamic_rotate %0 by %c1_i32 dim 0 : vector<16x8xf32>, i32 -> vector<16x8xf32>
    %cst = arith.constant 0.000000e+00 : f32
    %9 = vector.shape_cast %5 : vector<16x1xi1> to vector<16x1xi1>
    %10 = vector.broadcast %9 : vector<16x1xi1> to vector<16x8xi1>
    %11 = vector.broadcast %cst : f32 to vector<16x8xf32>
    %12 = arith.select %10, %8, %11 : vector<16x8xi1>, vector<16x8xf32>
    %c15_i32_2 = arith.constant 15 : i32
    %13 = tpu.dynamic_rotate %0 by %c15_i32_2 dim 0 : vector<16x8xf32>, i32 -> vector<16x8xf32>
    %cst_3 = arith.constant 0.000000e+00 : f32
    %14 = vector.shape_cast %7 : vector<16x1xi1> to vector<16x1xi1>
    %15 = vector.broadcast %14 : vector<16x1xi1> to vector<16x8xi1>
    %16 = vector.broadcast %cst_3 : f32 to vector<16x8xf32>
    %17 = arith.select %15, %13, %16 : vector<16x8xi1>, vector<16x8xf32>
    %18 = arith.truncf %0 : vector<16x8xf32> to vector<16x8xbf16>
    %c1 = arith.constant 1 : index
    %c0_4 = arith.constant 0 : index
    %c0_5 = arith.constant 0 : index
    %19 = vector.load %arg2[%c1, %c0_4, %c0_5] : memref<3x8x16xbf16, #tpu.memory_space<vmem>>, vector<1x8x16xbf16>
    %20 = vector.shape_cast %19 : vector<1x8x16xbf16> to vector<8x16xbf16>
    %cst_6 = arith.constant dense<0.000000e+00> : vector<16x16xf32>
    %21 = tpu.matmul %18, %20, %cst_6 {dimension_numbers = #tpu.dot_dimension_numbers<[1], [0], [0], [1], [0, 0, 1, 1], [], []>} : vector<16x8xbf16>, vector<8x16xbf16>, vector<16x16xf32> -> vector<16x16xf32>
    %22 = arith.truncf %12 : vector<16x8xf32> to vector<16x8xbf16>
    %c0_7 = arith.constant 0 : index
    %c0_8 = arith.constant 0 : index
    %c0_9 = arith.constant 0 : index
    %23 = vector.load %arg2[%c0_7, %c0_8, %c0_9] : memref<3x8x16xbf16, #tpu.memory_space<vmem>>, vector<1x8x16xbf16>
    %24 = vector.shape_cast %23 : vector<1x8x16xbf16> to vector<8x16xbf16>
    %cst_10 = arith.constant dense<0.000000e+00> : vector<16x16xf32>
    %25 = tpu.matmul %22, %24, %cst_10 {dimension_numbers = #tpu.dot_dimension_numbers<[1], [0], [0], [1], [0, 0, 1, 1], [], []>} : vector<16x8xbf16>, vector<8x16xbf16>, vector<16x16xf32> -> vector<16x16xf32>
    %26 = arith.addf %21, %25 : vector<16x16xf32>
    %27 = arith.truncf %17 : vector<16x8xf32> to vector<16x8xbf16>
    %c2 = arith.constant 2 : index
    %c0_11 = arith.constant 0 : index
    %c0_12 = arith.constant 0 : index
    %28 = vector.load %arg2[%c2, %c0_11, %c0_12] : memref<3x8x16xbf16, #tpu.memory_space<vmem>>, vector<1x8x16xbf16>
    %29 = vector.shape_cast %28 : vector<1x8x16xbf16> to vector<8x16xbf16>
    %cst_13 = arith.constant dense<0.000000e+00> : vector<16x16xf32>
    %30 = tpu.matmul %27, %29, %cst_13 {dimension_numbers = #tpu.dot_dimension_numbers<[1], [0], [0], [1], [0, 0, 1, 1], [], []>} : vector<16x8xbf16>, vector<8x16xbf16>, vector<16x16xf32> -> vector<16x16xf32>
    %31 = arith.addf %26, %30 : vector<16x16xf32>
    %cst_14 = arith.constant 0.000000e+00 : f32
    %32 = vector.broadcast %cst_14 : f32 to vector<16x16xf32>
    %33 = arith.cmpf ogt, %31, %32 : vector<16x16xf32>
    %cst_15 = arith.constant 0.00999999977 : f32
    %34 = vector.broadcast %cst_15 : f32 to vector<16x16xf32>
    %35 = arith.mulf %34, %31 : vector<16x16xf32>
    %36 = arith.select %33, %31, %35 : vector<16x16xi1>, vector<16x16xf32>
    %c1_i32_16 = arith.constant 1 : i32
    %37 = tpu.dynamic_rotate %36 by %c1_i32_16 dim 0 : vector<16x16xf32>, i32 -> vector<16x16xf32>
    %cst_17 = arith.constant 0.000000e+00 : f32
    %38 = vector.shape_cast %5 : vector<16x1xi1> to vector<16x1xi1>
    %39 = vector.broadcast %38 : vector<16x1xi1> to vector<16x16xi1>
    %40 = vector.broadcast %cst_17 : f32 to vector<16x16xf32>
    %41 = arith.select %39, %37, %40 : vector<16x16xi1>, vector<16x16xf32>
    %c15_i32_18 = arith.constant 15 : i32
    %42 = tpu.dynamic_rotate %36 by %c15_i32_18 dim 0 : vector<16x16xf32>, i32 -> vector<16x16xf32>
    %cst_19 = arith.constant 0.000000e+00 : f32
    %43 = vector.shape_cast %7 : vector<16x1xi1> to vector<16x1xi1>
    %44 = vector.broadcast %43 : vector<16x1xi1> to vector<16x16xi1>
    %45 = vector.broadcast %cst_19 : f32 to vector<16x16xf32>
    %46 = arith.select %44, %42, %45 : vector<16x16xi1>, vector<16x16xf32>
    %47 = arith.truncf %36 : vector<16x16xf32> to vector<16x16xbf16>
    %c1_20 = arith.constant 1 : index
    %c0_21 = arith.constant 0 : index
    %c0_22 = arith.constant 0 : index
    %48 = vector.load %arg3[%c1_20, %c0_21, %c0_22] : memref<3x16x8xbf16, #tpu.memory_space<vmem>>, vector<1x16x8xbf16>
    %49 = vector.shape_cast %48 : vector<1x16x8xbf16> to vector<16x8xbf16>
    %cst_23 = arith.constant dense<0.000000e+00> : vector<16x8xf32>
    %50 = tpu.matmul %47, %49, %cst_23 {dimension_numbers = #tpu.dot_dimension_numbers<[1], [0], [0], [1], [0, 0, 1, 1], [], []>} : vector<16x16xbf16>, vector<16x8xbf16>, vector<16x8xf32> -> vector<16x8xf32>
    %51 = arith.truncf %41 : vector<16x16xf32> to vector<16x16xbf16>
    %c0_24 = arith.constant 0 : index
    %c0_25 = arith.constant 0 : index
    %c0_26 = arith.constant 0 : index
    %52 = vector.load %arg3[%c0_24, %c0_25, %c0_26] : memref<3x16x8xbf16, #tpu.memory_space<vmem>>, vector<1x16x8xbf16>
    %53 = vector.shape_cast %52 : vector<1x16x8xbf16> to vector<16x8xbf16>
    %cst_27 = arith.constant dense<0.000000e+00> : vector<16x8xf32>
    %54 = tpu.matmul %51, %53, %cst_27 {dimension_numbers = #tpu.dot_dimension_numbers<[1], [0], [0], [1], [0, 0, 1, 1], [], []>} : vector<16x16xbf16>, vector<16x8xbf16>, vector<16x8xf32> -> vector<16x8xf32>
    %55 = arith.addf %50, %54 : vector<16x8xf32>
    %56 = arith.truncf %46 : vector<16x16xf32> to vector<16x16xbf16>
    %c2_28 = arith.constant 2 : index
    %c0_29 = arith.constant 0 : index
    %c0_30 = arith.constant 0 : index
    %57 = vector.load %arg3[%c2_28, %c0_29, %c0_30] : memref<3x16x8xbf16, #tpu.memory_space<vmem>>, vector<1x16x8xbf16>
    %58 = vector.shape_cast %57 : vector<1x16x8xbf16> to vector<16x8xbf16>
    %cst_31 = arith.constant dense<0.000000e+00> : vector<16x8xf32>
    %59 = tpu.matmul %56, %58, %cst_31 {dimension_numbers = #tpu.dot_dimension_numbers<[1], [0], [0], [1], [0, 0, 1, 1], [], []>} : vector<16x16xbf16>, vector<16x8xbf16>, vector<16x8xf32> -> vector<16x8xf32>
    %60 = arith.addf %55, %59 : vector<16x8xf32>
    %61 = arith.addf %0, %60 : vector<16x8xf32>
    %c0_32 = arith.constant 0 : index
    %c0_33 = arith.constant 0 : index
    %62 = vector.load %arg6[%c0_32, %c0_33] : memref<16x8xf32, #tpu.memory_space<vmem>>, vector<16x8xf32>
    tpu.vector_store %arg6[%c0_32, %c0_33], %61 {strides = array<i32>} : memref<16x8xf32, #tpu.memory_space<vmem>>, vector<16x8xf32>,
    %c0_34 = arith.constant 0 : index
    %c0_35 = arith.constant 0 : index
    %63 = tpu.strided_load %arg6[%c0_34, %c0_35] {strides = array<i32: 2, 1>} : memref<16x8xf32, #tpu.memory_space<vmem>>, vector<8x8xf32>
    %c1_36 = arith.constant 1 : index
    %c0_37 = arith.constant 0 : index
    %64 = tpu.strided_load %arg6[%c1_36, %c0_37] {strides = array<i32: 2, 1>} : memref<16x8xf32, #tpu.memory_space<vmem>>, vector<8x8xf32>
    %65 = arith.maximumf %63, %64 : vector<8x8xf32>
    %66 = arith.truncf %65 : vector<8x8xf32> to vector<8x8xbf16>
    %c0_38 = arith.constant 0 : index
    %c0_39 = arith.constant 0 : index
    %67 = vector.load %arg4[%c0_38, %c0_39] : memref<8x16xbf16, #tpu.memory_space<vmem>>, vector<8x16xbf16>
    %cst_40 = arith.constant dense<0.000000e+00> : vector<8x16xf32>
    %68 = tpu.matmul %66, %67, %cst_40 {dimension_numbers = #tpu.dot_dimension_numbers<[1], [0], [0], [1], [0, 0, 1, 1], [], []>} : vector<8x8xbf16>, vector<8x16xbf16>, vector<8x16xf32> -> vector<8x16xf32>
    %c0_41 = arith.constant 0 : index
    %c0_42 = arith.constant 0 : index
    %69 = vector.load %arg5[%c0_41, %c0_42] : memref<8x16xf32, #tpu.memory_space<vmem>>, vector<8x16xf32>
    tpu.vector_store %arg5[%c0_41, %c0_42], %68 {strides = array<i32>} : memref<8x16xf32, #tpu.memory_space<vmem>>, vector<8x16xf32>,
    return
  }
  func.func @transform_0(%arg0: i32) -> (i32, i32) {
    %c0_i32 = arith.constant 0 : i32
    %c0_i32_0 = arith.constant 0 : i32
    return %arg0, %c0_i32 : i32, i32
  }
  func.func @transform_1(%arg0: i32) -> (i32, i32, i32) {
    %c0_i32 = arith.constant 0 : i32
    %c0_i32_0 = arith.constant 0 : i32
    %c0_i32_1 = arith.constant 0 : i32
    %c0_i32_2 = arith.constant 0 : i32
    return %c0_i32, %c0_i32_0, %c0_i32_1 : i32, i32, i32
  }
  func.func @transform_2(%arg0: i32) -> (i32, i32, i32) {
    %c0_i32 = arith.constant 0 : i32
    %c0_i32_0 = arith.constant 0 : i32
    %c0_i32_1 = arith.constant 0 : i32
    %c0_i32_2 = arith.constant 0 : i32
    return %c0_i32, %c0_i32_0, %c0_i32_1 : i32, i32, i32
  }
  func.func @transform_3(%arg0: i32) -> (i32, i32) {
    %c0_i32 = arith.constant 0 : i32
    %c0_i32_0 = arith.constant 0 : i32
    %c0_i32_1 = arith.constant 0 : i32
    return %c0_i32, %c0_i32_0 : i32, i32
  }
  func.func @transform_4(%arg0: i32) -> (i32, i32) {
    %c0_i32 = arith.constant 0 : i32
    %c0_i32_0 = arith.constant 0 : i32
    return %arg0, %c0_i32 : i32, i32
  }
}

</mosaic_0001>

<bundles_post_ra>
// kernel: tpu_custom_call.1
= control target key start
LH: loop header
LB: loop body
LE: loop exit
PB: predicated region body
PF: predicated region fallthrough
CT: control target
= control target key end

     0   :  { %9 = vsyncpa [#allocation4], 0  ;;  %s846_s0 = inlined_call_operand.vmem [shape: f32[32,8], index: 0, kind: input, shape index: {}]   ;;  %s847_s1 = inlined_call_operand.vmem [shape: bf16[3,8,16], index: 1, kind: input, shape index: {}]   ;;  %s848_s2 = inlined_call_operand.vmem [shape: bf16[3,16,8], index: 2, kind: input, shape index: {}]   ;;  %s849_s3 = inlined_call_operand.vmem [shape: bf16[8,16], index: 3, kind: input, shape index: {}]   ;;  %s850_s4 = inlined_call_operand.hbm [shape: f32[16,16], index: 4, kind: output, shape index: {}]  }
   0x1   :  { %11 = vsyncpa [#allocation4 + $0x1], 0  ;;  %s677_s15 = smov 0   ;;  %s679_s16 = smov 0  }
   0x2   :  { %s681_s17 = smov 0   ;;  %s683_s18 = smov 0  }
   0x3 LB: > { %s698_s19 = sadd.s32 4294967295, %s650_s18   ;;  %s510_s20 = sadd.s32 4294967294, %s650_s18   ;;  %s650_s18 = sphi %s683_s18, %s860_s18   ;;  %s646_s17 = sphi %s681_s17, %s859_s17   ;;  %s642_s16 = sphi %s679_s16, %s858_s16   ;;  %s638_s15 = sphi %s677_s15, %s857_s15  }
   0x4   : > { %s702_s21 = sadd.s32 1, %s650_s18   ;;  %s113_s22 = sadd.s32 1, %s646_s17 }
   0x5   : > { %s110_s23 = ssub.s32 %s650_s18, %s702_s21  ;;  %p123_p0 = scmp.ne.s32.totalorder %s646_s17, %s642_s16 }
   0x6   : > { %p111_p1 = scmp.eq.s32.totalorder %s110_s23, 0  ;;  %p124_p2 = scmp.eq.s32.totalorder %s698_s19, 1 }
   0x7   : > { %p129_p3 = scmp.ne.s32.totalorder %s642_s16, %s638_s15  ;;  %p130_p4 = scmp.eq.s32.totalorder %s510_s20, 1 }
   0x8   : > { %s713_s24 = scalar_select %p111_p1, %s646_s17, %s113_s22  }
   0x9   : > { %p715_p5 = por %p124_p2, %p123_p0  ;;  %p719_p6 = por %p130_p4, %p129_p3 }
   0xa   : > { %p513_p7 = scmp.ge.s32.totalorder %s650_s18, 1  ;;  %p166_p8 = scmp.lt.s32.totalorder %s650_s18, 3 }
   0xc   : > { %p167_p9 = pnand %p513_p7, %p166_p8 }
   0xd   : > { %s515_s29 = sshll.u32 (!%p167_p9), %s698_s19, 1  ;;  %s543_s30 = sshll.u32 (!%p167_p9), %s698_s19, 3 }
   0xe   : > { %170 = sbr.rel (%p167_p9) target bundleno = 480 (0x1e0), region = 36  ;;  %p193_p10 = scmp.lt.s32.totalorder (!%p167_p9), %s515_s29, 3 }
   0xf   : > { %s608_s22 = scalar_lea.hbm (!%p167_p9), %s850_s4, 16 }
  0x13   : > { %v517_v0 = vld [vmem:[%s847_s1 + $0x4] sm:$0xf]  ;;  %vm241_vm0 = vcmask 1043456   ;;  %v201_v1 = vlaneseq  ;;  %v236_v3 = vld [vmem:[%s847_s1] sm:$0xf]  ;;  %s862_s29 = smov (!%p193_p10, %s515_s29), 3 }
  0x14   : > { %v263_v2 = vsel %vm241_vm0, %v517_v0, 0  ;;  %v520_v4 = vld [vmem:[%s847_s1 + $0x8] sm:$0xf]  ;;  %v243_v5 = vsel %vm241_vm0, %v236_v3, 0  ;;  %s516_s8 = sshll.u32 %s862_s29, 3  ;;  %vm237_vm1 = vcmask 64512  }
  0x15   : > { %272 = vmatpush.bf16.msra.mxu1 %v263_v2  ;;  %v286_v6 = vsel %vm241_vm0, %v520_v4, 0  ;;  %v738_v7 = vshrl.u32 %v201_v1, 7  ;;  %252 = vmatpush.bf16.msra.mxu0 %v243_v5  ;;  %s196_s11 = scalar_lea.vmem %s846_s0, %s516_s8  ;;  %v546_v28 = vld [vmem:[%s848_s2 + $0x8] sm:$0xff]  ;;  %v548_v29 = vld [vmem:[%s848_s2 + $0x10] sm:$0xff]  ;;  %v547_v30 = vld [vmem:[%s848_s2] sm:$0xff]  ;;  %vm335_vm8 = vcmask 130048   ;;  %s446_s8 = scalar_lea.hbm %s850_s4, %s543_s30 }
  0x16   : > { %295 = vmatpush.bf16.msra.mxu2 %v286_v6  ;;  %v745_v11 = vld [vmem:[%s196_s11] sm:$0xff]  ;;  %v747_v12 = vld [vmem:[%s196_s11 + $0x8] sm:$0xff]  ;;  %346 = vmatpush.bf16.msra.mxu3 %v547_v30  ;;  %s189_s29 = sand.u32 1, %s642_s16   ;;  %s450_s11 = sshll.u32 %s446_s8, 4  ;;  %s451_s11 = int_to_ptr.hbm [resolvable:$true] %s450_s11 }
  0x17   : > { %v204_v8 = vand.u32 15, %v738_v7  ;;  %v203_v9 = vadd.s32 8, %v738_v7  ;;  %vm212_vm2 = vcmp.lt.s32.totalorder %v738_v7, 1  ;;  %vm223_vm3 = vcmp.lt.s32.totalorder %v738_v7, 7  ;;  %v414_v58 = vld [vmem:[%s849_s3] sm:$0xf] }
  0x18   : > { %v232_v13 = vpack.c.bf16 %v747_v12, %v745_v11  ;;  %v210_v15 = vrot.slane %v745_v11, 7  ;;  %v211_v16 = vrot.slane %v747_v12, 7  ;;  %v221_v18 = vrot.slane %v745_v11, 1  ;;  %s514_s5 = sshll.u32 %s189_s29, 3  ;;  %s436_s12 = scalar_lea.sflag [#allocation4], %s189_s29 }
  0x19   : > { %v205_v10 = vand.u32 15, %v203_v9  ;;  %vm753_vm4 = vcmp.ne.s32.totalorder %v204_v8, 0  ;;  %v222_v19 = vrot.slane %v747_v12, 1  ;;  %369 = vmatpush.bf16.msrb.mxu0 %v546_v28  ;;  %396 = vmatpush.bf16.msrb.mxu1 %v548_v29  ;;  %v419_v59 = vsel %vm241_vm0, %v414_v58, 0  ;;  %s191_s9 = scalar_lea.vmem [#allocation3], %s514_s5  ;;  %s602_s13 = sshra.s32 %s451_s11, 4  ;;  %s603_s13 = int_to_ptr.hbm [resolvable:$true] %s602_s13 }
  0x1a   : > { %519 = vmatmul.msk.bf16.vlgmr.msra.gmra.mxu1 %vm237_vm1, %v232_v13  ;;  %v213_v20 = vsel %vm212_vm2, %v210_v15, %v211_v16  ;;  %v214_v21 = vsel %vm212_vm2, %v211_v16, %v210_v15  ;;  %428 = vmatpush.bf16.msrb.mxu2 %v419_v59  ;;  %s448_s10 = sshll.u32 %s191_s9, 4  ;;  %s604_s14 = scalar_lea.hbm %s603_s13, 8  ;;  %s449_s10 = int_to_ptr.vmem [resolvable:$true] %s448_s10 }
  0x1b   : > { %vm759_vm5 = vcmp.ne.s32.totalorder %v205_v10, 15  ;;  %v219_v22 = vsel %vm753_vm4, %v214_v21, 0.0  ;;  %v224_v23 = vsel %vm223_vm3, %v221_v18, %v222_v19  ;;  %v225_v24 = vsel %vm223_vm3, %v222_v19, %v221_v18  ;;  %p605_p11 = scmp.ne.s32.totalorder %s603_s13, %s604_s14  ;;  %p609_p0 = scmp.lt.s32.totalorder %s603_s13, %s850_s4 }
  0x1c   : > { %v235_v25 = vpack.c.bf16 %v213_v20, %v219_v22  ;;  %v231_v26 = vsel %vm759_vm5, %v225_v24, 0.0  ;;  %p610_p1 = scmp.lt.s32.totalorder %s608_s22, %s604_s14 }
  0x1d   : > { %v279_v27 = vpack.c.bf16 %v231_v26, %v224_v23  ;;  %p606_p12 = pnand %p605_p11, %p715_p5 }
  0x1e   : > { %518 = vmatmul.msk.bf16.vlgmr.msra.gmra.mxu0 %vm237_vm1, %v235_v25  ;;  %p611_p2 = por %p610_p1, %p609_p0 }
  0x1f   : > { %521 = vmatmul.msk.bf16.vlgmr.msra.gmra.mxu2 %vm237_vm1, %v279_v27  ;;  %p607_p13 = pneg %p606_p12 }
  0x21   : > { %p612_p3 = pnand %p611_p2, %p607_p13 }
  0x97   : > { %v274_v32 = vpop.f32.mrf.mxu1 }
  0x9b   : > { %v254_v31 = vpop.f32.mrf.mxu0 }
  0x9c   : > { %v275_v33 = vadd.f32 %v274_v32, %v254_v31 }
  0x9f   : > { %v276_v37 = vpop.f32.mrf.mxu1 }
  0xa2   : > { %v297_v34 = vpop.f32.mrf.mxu2 }
  0xa3   : > { %v302_v35 = vadd.f32 %v297_v34, %v275_v33  ;;  %v256_v36 = vpop.f32.mrf.mxu0 }
  0xa4   : > { %v277_v39 = vadd.f32 %v276_v37, %v256_v36 }
  0xa5   : > { %v306_v38 = vmul.f32 0.01, %v302_v35  ;;  %vm304_vm6 = vcmp.gt.f32.partialorder %v302_v35, 0.0 }
  0xa7   : > { %v308_v42 = vsel %vm304_vm6, %v302_v35, %v306_v38 }
  0xa8   : > { %v310_v44 = vrot.slane %v308_v42, 7  ;;  %v316_v46 = vrot.slane %v308_v42, 1 }
  0xaa   : > { %v299_v40 = vpop.f32.mrf.mxu2 }
  0xab   : > { %v303_v41 = vadd.f32 %v299_v40, %v277_v39 }
  0xad   : > { %vm305_vm7 = vcmp.gt.f32.partialorder %v303_v41, 0.0  ;;  %v307_v43 = vmul.f32 0.01, %v303_v41 }
  0xaf   : > { %v309_v45 = vsel %vm305_vm7, %v303_v41, %v307_v43 }
  0xb0   : > { %v311_v47 = vrot.slane %v309_v45, 7  ;;  %v317_v48 = vrot.slane %v309_v45, 1  ;;  %v322_v49 = vpack.c.bf16 %v309_v45, %v308_v42 }
  0xb2   : > { %533 = vmatmul.msk.bf16.vlgmr.msrb.gmra.mxu0 %vm335_vm8, %v322_v49  ;;  %v312_v50 = vsel %vm212_vm2, %v310_v44, %v311_v47  ;;  %v313_v51 = vsel %vm212_vm2, %v311_v47, %v310_v44  ;;  %v318_v52 = vsel %vm223_vm3, %v316_v46, %v317_v48  ;;  %v319_v53 = vsel %vm223_vm3, %v317_v48, %v316_v46 }
  0xb3   : > { %v314_v54 = vsel %vm753_vm4, %v313_v51, 0.0  ;;  %v321_v55 = vsel %vm759_vm5, %v319_v53, 0.0 }
  0xb4   : > { %v326_v56 = vpack.c.bf16 %v312_v50, %v314_v54  ;;  %v376_v57 = vpack.c.bf16 %v321_v55, %v318_v52 }
  0xb6   : > { %528 = vmatmul.msk.bf16.vlgmr.msra.gmra.mxu3 %vm335_vm8, %v326_v56  ;;  %540 = vmatmul.msk.bf16.vlgmr.msrb.gmra.mxu1 %vm335_vm8, %v376_v57 }
 0x12f   : > { %v371_v60 = vpop.f32.mrf.mxu0 }
 0x133   : > { %v398_v61 = vpop.f32.mrf.mxu1 }
 0x137   : > { %v373_v2 = vpop.f32.mrf.mxu0 }
 0x139   : > { %v348_v62 = vpop.f32.mrf.mxu3 }
 0x13a   : > { %v372_v63 = vadd.f32 %v371_v60, %v348_v62 }
 0x13b   : > { %v400_v5 = vpop.f32.mrf.mxu1 }
 0x13c   : > { %v403_v0 = vadd.f32 %v398_v61, %v372_v63 }
 0x13e   : > { %v405_v1 = vadd.f32 %v403_v0, %v745_v11 }
 0x140   : > { %407 = vst.msk [vmem:[#allocation2] sm:$0xff] %vm237_vm1, %v405_v1 }
 0x141   : > { %v350_v3 = vpop.f32.mrf.mxu3 }
 0x142   : > { %v374_v4 = vadd.f32 %v373_v2, %v350_v3 }
 0x144   : > { %v404_v6 = vadd.f32 %v400_v5, %v374_v4 }
 0x146   : > { %v406_v7 = vadd.f32 %v404_v6, %v747_v12 }
 0x148   : > { %408 = vst.msk [vmem:[#allocation2 + $0x8] sm:$0xff] %vm237_vm1, %v406_v7 }
 0x14f   : > { %v409_v8 = vld [vmem:[#allocation2] ss:$2 sm:$0xff]  ;;  %v411_v9 = vld [vmem:[#allocation2 + $0x1] ss:$2 sm:$0xff] }
 0x150   : > { %v412_v10 = vmax.f32 %v409_v8, %v411_v9 }
 0x152   : > { %v413_v13 = vpack.c.bf16 %v412_v10, %v412_v10 }
 0x154   : > { %541 = vmatmul.msk.bf16.vlgmr.msrb.gmra.mxu2 %vm237_vm1, %v413_v13 }
 0x1d7   : > { %v430_v11 = vpop.f32.mrf.mxu2 }
 0x1d8   : > { %434 = vst.msk [vmem:[%s191_s9] sm:$0xff] %vm335_vm8, %v430_v11 }
 0x1d9   : > { %615 = shalt.err (!%p612_p3)
}
 0x1da   : > { %549 = dma.vmem_to_hbm [thread:$0]  (%p715_p5), %s449_s10, 128, %s451_s11, %s436_s12  }
 0x1df   : > { %v432_v12 = vpop.f32.mrf.mxu2 }
 0x1e0 PF: > { %p555_p4 = scmp.ge.s32.totalorder %s650_s18, 2  ;;  %s462_s28 = sand.u32 1, %s638_s15  }
 0x1e1   : > { %s463_s29 = scalar_lea.sflag [#allocation4], %s462_s28 }
 0x1e2   : > { %p552_p7 = pnand %p555_p4, %p719_p6 }
 0x1e4   : > { %p553_p8 = pneg %p552_p7 }
 0x1e6   : > { %633 = dma.done.wait (%p553_p8), %s463_s29, 128  }
 0x1e7   : > { %635 = vsyncadd (%p553_p8), %s463_s29, 4294967168  ;;  %p14_p9 = scmp.ge.s32.totalorder %s702_s21, 4   ;;  %s857_s15 = smov %s642_s16 }
 0x1e8   : > { %s858_s16 = smov %s646_s17  ;;  %s859_s17 = smov %s713_s24 }
 0x1e9   : > { %s860_s18 = smov %s702_s21  ;;  %16 = sbr.rel (!%p14_p9) target bundleno = 3 (0x3), region = 76 }
 0x1ee   :  { %469 = vsyncpa [#allocation4], 1 }
 0x1ef   :  { %471 = vsyncpa [#allocation4 + $0x1], 1 }

</bundles_post_ra>
